<compile_context>
chip_gen: v5e
topology: v5e:2x2
jax: 0.10.0
libtpu: 0.0.40
codegen_flags: <defaults>
</compile_context>

<pallas_src>
import functools

import jax
import jax.numpy as jnp
from jax.experimental import pallas as pl
from jax.experimental.pallas import tpu as pltpu


def _round_up(x, m):
    return ((x + m - 1) // m) * m


def _cdiv(a, b):
    return (a + b - 1) // b


def _device_kind():
    try:
        return jax.devices()[0].device_kind.lower()
    except Exception:
        return ""


def _num_tensorcores():
    # v7x packs 2 TensorCores per chip; v5e/v6e have 1.
    return 2 if "v7" in _device_kind() else 1


def _act_dtype():
    # bf16 VPU/EUP exists on v6e/v7x; v5e keeps tanh / bias-add in f32.
    kind = _device_kind()
    if "v6" in kind or "v7" in kind:
        return jnp.bfloat16
    return jnp.float32


# ---------------------------------------------------------------------------
# Kernel
# ---------------------------------------------------------------------------
def _critic_kernel(state_ref, w1_ref, w2_ref, w3_ref, tail_ref, out_ref, *,
                   act_dtype):
    mdt = w1_ref.dtype                       # MXU input dtype (bf16)

    # Packed (8, hidden) f32 operand: biases, final-layer row, final bias.
    b1 = tail_ref[0:1, :]                    # (1, H)
    b2 = tail_ref[1:2, :]
    b3 = tail_ref[2:3, :]
    w4 = tail_ref[3:4, :]                    # (1, H) final-layer weight row
    b4 = tail_ref[4:5, 0:1]                  # (1, 1)

    x = state_ref[...].astype(mdt)

    # Hidden layers: bf16 MXU matmuls with f32 accumulation; f32 bias add;
    # tanh evaluated in act_dtype (bf16 EUP on v6e/v7x, f32 on v5e).
    h = jnp.dot(x, w1_ref[...], preferred_element_type=jnp.float32) + b1
    h = jnp.tanh(h.astype(act_dtype))
    h = jnp.dot(h.astype(mdt), w2_ref[...],
                preferred_element_type=jnp.float32) + b2
    h = jnp.tanh(h.astype(act_dtype))
    h = jnp.dot(h.astype(mdt), w3_ref[...],
                preferred_element_type=jnp.float32) + b3
    h = jnp.tanh(h.astype(act_dtype))

    # Final layer (single output feature): VPU multiply + lane (XLU) reduction
    # instead of an N=1 MXU matmul.  Output store stays (tm, 1).
    v = jnp.sum(h.astype(jnp.float32) * w4, axis=-1, keepdims=True) + b4
    out_ref[...] = v.astype(out_ref.dtype)


# ---------------------------------------------------------------------------
# Tile selection (VMEM-aware, megacore-aware)
# ---------------------------------------------------------------------------
_VMEM_BUDGET = 24 * 1024 * 1024     # stay below every generation's scoped ceiling
_VMEM_LIMIT = 32 * 1024 * 1024      # explicit scoped-VMEM limit handed to Mosaic


def _select_tile(batch, state_dim, hidden, block_rows, num_cores):
    block_rows = max(8, (block_rows // 8) * 8)          # sublane multiple
    b_pad8 = _round_up(batch, 8)

    sdp = _round_up(state_dim, 128)                     # lane-padded widths
    hdp = _round_up(hidden, 128)

    # Resident weights + packed tail (count double-buffered to be safe).
    weight_bytes = 2 * ((sdp * hdp + 2 * hdp * hdp) * 2 + 8 * hdp * 4)
    # Per batch-row: double-buffered f32 state block, double-buffered
    # lane-padded (tm, 1) output block, headroom for f32/bf16 activations.
    bytes_per_row = 2 * sdp * 4 + 2 * 128 * 4 + 6 * hdp * 4

    avail = max(_VMEM_BUDGET - weight_bytes, 8 * bytes_per_row)
    tm_vmem = max(8, (avail // bytes_per_row) // 8 * 8)

    # On megacore parts keep >= 2 grid steps per TensorCore for big batches so
    # dimension_semantics=("parallel",) can shard the batch grid across TCs.
    min_steps = 2 * num_cores if num_cores > 1 else 1
    tm_split = _round_up(_cdiv(b_pad8, min_steps), 8)

    return max(8, min(block_rows, tm_vmem, tm_split, b_pad8))


# ---------------------------------------------------------------------------
# Wrapper (jitted: pad / cast / pack / slice all fuse around the Pallas call)
# ---------------------------------------------------------------------------
@functools.partial(jax.jit, static_argnames=("block_rows",))
def critic_forward(state, params, *, block_rows=4096):
    """state: (B, state_dim) f32.
    params: dict with w1..w4 stored as (in_features, out_features) and
    b1..b4 stored as (1, out_features) f32 arrays (see init_critic_params)."""
    batch, state_dim = state.shape
    hidden = params["w1"].shape[1]

    act_dtype = _act_dtype()
    mxu_dtype = jnp.bfloat16                 # explicit MXU input dtype everywhere

    tm = _select_tile(batch, state_dim, hidden, block_rows, _num_tensorcores())
    b_pad = _round_up(batch, tm)
    if b_pad != batch:
        state = jnp.pad(state, ((0, b_pad - batch), (0, 0)))

    w1 = params["w1"].astype(mxu_dtype)
    w2 = params["w2"].astype(mxu_dtype)
    w3 = params["w3"].astype(mxu_dtype)

    # Pack biases + final-layer weight row + final bias into one (8, H) f32
    # operand: a single constant-index VMEM tile instead of five tiny ones.
    tail = jnp.zeros((8, hidden), jnp.float32)
    tail = tail.at[0, :].set(params["b1"].reshape(-1).astype(jnp.float32))
    tail = tail.at[1, :].set(params["b2"].reshape(-1).astype(jnp.float32))
    tail = tail.at[2, :].set(params["b3"].reshape(-1).astype(jnp.float32))
    tail = tail.at[3, :].set(params["w4"].reshape(-1).astype(jnp.float32))
    tail = tail.at[4, 0].set(params["b4"].reshape(-1)[0].astype(jnp.float32))

    const = lambda i: (0, 0)
    grid = (b_pad // tm,)

    out = pl.pallas_call(
        functools.partial(_critic_kernel, act_dtype=act_dtype),
        out_shape=jax.ShapeDtypeStruct((b_pad, 1), jnp.float32),
        grid=grid,
        in_specs=[
            pl.BlockSpec((tm, state_dim), lambda i: (i, 0)),
            pl.BlockSpec(w1.shape, const),
            pl.BlockSpec(w2.shape, const),
            pl.BlockSpec(w3.shape, const),
            pl.BlockSpec(tail.shape, const),
        ],
        out_specs=pl.BlockSpec((tm, 1), lambda i: (i, 0)),
        compiler_params=pltpu.CompilerParams(
            dimension_semantics=("parallel",),
            vmem_limit_bytes=_VMEM_LIMIT),
    )(state, w1, w2, w3, tail)

    return out[:batch]


# ---------------------------------------------------------------------------
# Params init (PyTorch nn.Linear-style) + pure-JAX reference
# ---------------------------------------------------------------------------
def init_critic_params(key, state_dim, hidden_dim=64):
    """PyTorch-style init: U(-1/sqrt(fan_in), 1/sqrt(fan_in)).
    Weights stored as (in_features, out_features); biases as (1, out_features)."""
    dims = [(state_dim, hidden_dim),
            (hidden_dim, hidden_dim),
            (hidden_dim, hidden_dim),
            (hidden_dim, 1)]
    params = {}
    for i, (fan_in, fan_out) in enumerate(dims, start=1):
        key, kw, kb = jax.random.split(key, 3)
        bound = 1.0 / jnp.sqrt(jnp.float32(fan_in))
        params[f"w{i}"] = jax.random.uniform(
            kw, (fan_in, fan_out), jnp.float32, -bound, bound)
        params[f"b{i}"] = jax.random.uniform(
            kb, (1, fan_out), jnp.float32, -bound, bound)
    return params


def critic_reference(state, params):
    """Pure-JAX f32 reference for correctness checking."""
    h = jnp.tanh(state @ params["w1"] + params["b1"])
    h = jnp.tanh(h @ params["w2"] + params["b2"])
    h = jnp.tanh(h @ params["w3"] + params["b3"])
    return h @ params["w4"] + params["b4"]


if __name__ == "__main__":
    key = jax.random.PRNGKey(0)
    k_params, k_state, k_state2 = jax.random.split(key, 3)

    batch = 8
    state_dim = 16
    hidden_dim = 32

    params = init_critic_params(k_params, state_dim, hidden_dim)

    # MXU inputs are bf16 on every generation -> compare loosely vs f32 ref.
    tol = 5e-2

    # Case 1: small batch (single grid step).
    state = jax.random.normal(k_state, (batch, state_dim), jnp.float32)
    value = jax.block_until_ready(critic_forward(state, params))
    ref = critic_reference(state, params)
    assert value.shape == (batch, 1), value.shape
    assert jnp.allclose(value, ref, atol=tol, rtol=tol), (
        f"max abs err = {jnp.max(jnp.abs(value - ref))}")

    # Case 2: batch not a multiple of 8 + tiny block_rows -> exercises the
    # padding path and a multi-step ("parallel") batch grid.
    state2 = jax.random.normal(k_state2, (13, state_dim), jnp.float32)
    value2 = jax.block_until_ready(critic_forward(state2, params, block_rows=8))
    ref2 = critic_reference(state2, params)
    assert value2.shape == (13, 1), value2.shape
    assert jnp.allclose(value2, ref2, atol=tol, rtol=tol), (
        f"max abs err = {jnp.max(jnp.abs(value2 - ref2))}")

    print("KERNEL_OK")
</pallas_src>

<mosaic_0001>
module attributes {stable_mosaic.version = 11 : i64} {
  func.func @_critic_kernel(%arg0: i32, %arg1: memref<8x16xf32, #tpu.memory_space<vmem>>, %arg2: memref<16x32xbf16, #tpu.memory_space<vmem>>, %arg3: memref<32x32xbf16, #tpu.memory_space<vmem>>, %arg4: memref<32x32xbf16, #tpu.memory_space<vmem>>, %arg5: memref<8x32xf32, #tpu.memory_space<vmem>>, %arg6: memref<8x1xf32, #tpu.memory_space<vmem>>) attributes {dimension_semantics = [#tpu.dimension_semantics<parallel>], iteration_bounds = array<i64: 1>, scalar_prefetch = 0 : i64, scratch_operands = 0 : i64, tpu.core_type = #tpu.core_type<tc>, window_params = [{transform_indices = @transform_0, window_bounds = array<i64: 8, 16>}, {pipeline_mode = #tpu.pipeline_mode<synchronous>, transform_indices = @transform_1, window_bounds = array<i64: 16, 32>}, {pipeline_mode = #tpu.pipeline_mode<synchronous>, transform_indices = @transform_2, window_bounds = array<i64: 32, 32>}, {pipeline_mode = #tpu.pipeline_mode<synchronous>, transform_indices = @transform_3, window_bounds = array<i64: 32, 32>}, {pipeline_mode = #tpu.pipeline_mode<synchronous>, transform_indices = @transform_4, window_bounds = array<i64: 8, 32>}, {transform_indices = @transform_5, window_bounds = array<i64: 8, 1>}]} {
    %c0 = arith.constant 0 : index
    %c0_0 = arith.constant 0 : index
    %0 = vector.load %arg5[%c0, %c0_0] : memref<8x32xf32, #tpu.memory_space<vmem>>, vector<1x32xf32>
    %c1 = arith.constant 1 : index
    %c0_1 = arith.constant 0 : index
    %1 = vector.load %arg5[%c1, %c0_1] : memref<8x32xf32, #tpu.memory_space<vmem>>, vector<1x32xf32>
    %c2 = arith.constant 2 : index
    %c0_2 = arith.constant 0 : index
    %2 = vector.load %arg5[%c2, %c0_2] : memref<8x32xf32, #tpu.memory_space<vmem>>, vector<1x32xf32>
    %c3 = arith.constant 3 : index
    %c0_3 = arith.constant 0 : index
    %3 = vector.load %arg5[%c3, %c0_3] : memref<8x32xf32, #tpu.memory_space<vmem>>, vector<1x32xf32>
    %c4 = arith.constant 4 : index
    %c0_4 = arith.constant 0 : index
    %4 = vector.load %arg5[%c4, %c0_4] : memref<8x32xf32, #tpu.memory_space<vmem>>, vector<1x1xf32>
    %c0_5 = arith.constant 0 : index
    %c0_6 = arith.constant 0 : index
    %5 = vector.load %arg1[%c0_5, %c0_6] : memref<8x16xf32, #tpu.memory_space<vmem>>, vector<8x16xf32>
    %6 = arith.truncf %5 : vector<8x16xf32> to vector<8x16xbf16>
    %c0_7 = arith.constant 0 : index
    %c0_8 = arith.constant 0 : index
    %7 = vector.load %arg2[%c0_7, %c0_8] : memref<16x32xbf16, #tpu.memory_space<vmem>>, vector<16x32xbf16>
    %cst = arith.constant dense<0.000000e+00> : vector<8x32xf32>
    %8 = tpu.matmul %6, %7, %cst {dimension_numbers = #tpu.dot_dimension_numbers<[1], [0], [0], [1], [0, 0, 1, 1], [], []>} : vector<8x16xbf16>, vector<16x32xbf16>, vector<8x32xf32> -> vector<8x32xf32>
    %9 = vector.broadcast %0 : vector<1x32xf32> to vector<8x32xf32>
    %10 = arith.addf %8, %9 : vector<8x32xf32>
    %11 = math.tanh %10 : vector<8x32xf32>
    %12 = arith.truncf %11 : vector<8x32xf32> to vector<8x32xbf16>
    %c0_9 = arith.constant 0 : index
    %c0_10 = arith.constant 0 : index
    %13 = vector.load %arg3[%c0_9, %c0_10] : memref<32x32xbf16, #tpu.memory_space<vmem>>, vector<32x32xbf16>
    %cst_11 = arith.constant dense<0.000000e+00> : vector<8x32xf32>
    %14 = tpu.matmul %12, %13, %cst_11 {dimension_numbers = #tpu.dot_dimension_numbers<[1], [0], [0], [1], [0, 0, 1, 1], [], []>} : vector<8x32xbf16>, vector<32x32xbf16>, vector<8x32xf32> -> vector<8x32xf32>
    %15 = vector.broadcast %1 : vector<1x32xf32> to vector<8x32xf32>
    %16 = arith.addf %14, %15 : vector<8x32xf32>
    %17 = math.tanh %16 : vector<8x32xf32>
    %18 = arith.truncf %17 : vector<8x32xf32> to vector<8x32xbf16>
    %c0_12 = arith.constant 0 : index
    %c0_13 = arith.constant 0 : index
    %19 = vector.load %arg4[%c0_12, %c0_13] : memref<32x32xbf16, #tpu.memory_space<vmem>>, vector<32x32xbf16>
    %cst_14 = arith.constant dense<0.000000e+00> : vector<8x32xf32>
    %20 = tpu.matmul %18, %19, %cst_14 {dimension_numbers = #tpu.dot_dimension_numbers<[1], [0], [0], [1], [0, 0, 1, 1], [], []>} : vector<8x32xbf16>, vector<32x32xbf16>, vector<8x32xf32> -> vector<8x32xf32>
    %21 = vector.broadcast %2 : vector<1x32xf32> to vector<8x32xf32>
    %22 = arith.addf %20, %21 : vector<8x32xf32>
    %23 = math.tanh %22 : vector<8x32xf32>
    %24 = vector.broadcast %3 : vector<1x32xf32> to vector<8x32xf32>
    %25 = arith.mulf %23, %24 : vector<8x32xf32>
    %cst_15 = arith.constant dense<0.000000e+00> : vector<8xf32>
    %26 = vector.multi_reduction <add>, %25, %cst_15 [1] : vector<8x32xf32> to vector<8xf32>
    %27 = vector.shape_cast %26 : vector<8xf32> to vector<8x1xf32>
    %28 = vector.broadcast %4 : vector<1x1xf32> to vector<8x1xf32>
    %29 = arith.addf %27, %28 : vector<8x1xf32>
    %c0_16 = arith.constant 0 : index
    %c0_17 = arith.constant 0 : index
    %30 = vector.load %arg6[%c0_16, %c0_17] : memref<8x1xf32, #tpu.memory_space<vmem>>, vector<8x1xf32>
    tpu.vector_store %arg6[%c0_16, %c0_17], %29 {strides = array<i32>} : memref<8x1xf32, #tpu.memory_space<vmem>>, vector<8x1xf32>,
    return
  }
  func.func @transform_0(%arg0: i32) -> (i32, i32) {
    %c0_i32 = arith.constant 0 : i32
    %c0_i32_0 = arith.constant 0 : i32
    return %arg0, %c0_i32 : i32, i32
  }
  func.func @transform_1(%arg0: i32) -> (i32, i32) {
    %c0_i32 = arith.constant 0 : i32
    %c0_i32_0 = arith.constant 0 : i32
    %c0_i32_1 = arith.constant 0 : i32
    return %c0_i32, %c0_i32_0 : i32, i32
  }
  func.func @transform_2(%arg0: i32) -> (i32, i32) {
    %c0_i32 = arith.constant 0 : i32
    %c0_i32_0 = arith.constant 0 : i32
    %c0_i32_1 = arith.constant 0 : i32
    return %c0_i32, %c0_i32_0 : i32, i32
  }
  func.func @transform_3(%arg0: i32) -> (i32, i32) {
    %c0_i32 = arith.constant 0 : i32
    %c0_i32_0 = arith.constant 0 : i32
    %c0_i32_1 = arith.constant 0 : i32
    return %c0_i32, %c0_i32_0 : i32, i32
  }
  func.func @transform_4(%arg0: i32) -> (i32, i32) {
    %c0_i32 = arith.constant 0 : i32
    %c0_i32_0 = arith.constant 0 : i32
    %c0_i32_1 = arith.constant 0 : i32
    return %c0_i32, %c0_i32_0 : i32, i32
  }
  func.func @transform_5(%arg0: i32) -> (i32, i32) {
    %c0_i32 = arith.constant 0 : i32
    %c0_i32_0 = arith.constant 0 : i32
    return %arg0, %c0_i32 : i32, i32
  }
}

</mosaic_0001>

<bundles_post_ra>
// kernel: critic_forward.1
= control target key start
LH: loop header
LB: loop body
LE: loop exit
PB: predicated region body
PF: predicated region fallthrough
CT: control target
= control target key end

     0   :  { %vm37_vm0 = vcmask 130048   ;;  %vm73_vm1 = vcmask 261120   ;;  %vm133_vm2 = vcmask 7168   ;;  %s247_s1 = inlined_call_operand.vmem [shape: bf16[16,32], index: 1, kind: input, shape index: {}]   ;;  %s248_s0 = inlined_call_operand.vmem [shape: f32[8,16], index: 0, kind: input, shape index: {}]   ;;  %s249_s4 = inlined_call_operand.vmem [shape: f32[8,32], index: 4, kind: input, shape index: {}]   ;;  %s250_s2 = inlined_call_operand.vmem [shape: bf16[32,32], index: 2, kind: input, shape index: {}]   ;;  %s251_s3 = inlined_call_operand.vmem [shape: bf16[32,32], index: 3, kind: input, shape index: {}]   ;;  %s252_s5 = inlined_call_operand.vmem [shape: f32[8,1], index: 5, kind: output, shape index: {}]  }
   0x1   :  { %v162_v0 = vld [vmem:[%s247_s1] sm:$0xff]  ;;  %v164_v3 = vld [vmem:[%s250_s2 + $0x8] sm:$0xff] }
   0x2   :  { %v26_v1 = vld [vmem:[%s248_s0] sm:$0xff]  ;;  %48 = vmatpush.bf16.msra.mxu0 %v162_v0  ;;  %83 = vmatpush.bf16.msra.mxu1 %v164_v3  ;;  %v166_v11 = vld [vmem:[%s251_s3 + $0x8] sm:$0xff] }
   0x3   :  { %v27_v2 = vpack.c.bf16 %v26_v1, %v26_v1  ;;  %v163_v4 = vld [vmem:[%s250_s2] sm:$0xff]  ;;  %118 = vmatpush.bf16.msra.mxu2 %v166_v11 }
   0x4   :  { %v167_v5 = vld [vmem:[%s249_s4] ss:$0 sm:$0xff]  ;;  %v168_v13 = vld [vmem:[%s249_s4 + $0x1] ss:$0 sm:$0xff]  ;;  %v169_v19 = vld [vmem:[%s249_s4 + $0x2] ss:$0 sm:$0xff] }
   0x5   :  { %143 = vmatmul.msk.bf16.vlgmr.msra.gmra.mxu0 %vm37_vm0, %v27_v2  ;;  %v165_v12 = vld [vmem:[%s251_s3] sm:$0xff] }
   0x6   :  { %84 = vmatpush.bf16.msra.mxu1 %v163_v4  ;;  %v170_v22 = vld [vmem:[%s249_s4 + $0x3] ss:$0 sm:$0xff]  ;;  %v171_v27 = vld [vmem:[%s249_s4 + $0x4] ss:$0 sm:$0xff] }
   0x7   :  { %119 = vmatpush.bf16.msra.mxu2 %v165_v12 }
  0x82   :  { %v50_v6 = vpop.f32.mrf.mxu0 }
  0x83   :  { %v51_v7 = vadd.f32 %v167_v5, %v50_v6 }
  0x85   :  { %172 = vtanh.f32 %v51_v7 }
  0x8a   :  { %v52_v8 = vpop.f32.mrf.mxu0 }
  0x8b   :  { %v173_v9 = vpop.eup %172 }
  0x8c   :  { %v55_v10 = vpack.c.bf16 %v173_v9, %v173_v9 }
  0x8e   :  { %152 = vmatmul.msk.bf16.vlgmr.msra.gmra.mxu1 %vm73_vm1, %v55_v10 }
 0x10b   :  { %v86_v14 = vpop.f32.mrf.mxu1 }
 0x10c   :  { %v87_v15 = vadd.f32 %v168_v13, %v86_v14 }
 0x10e   :  { %174 = vtanh.f32 %v87_v15 }
 0x113   :  { %v88_v16 = vpop.f32.mrf.mxu1 }
 0x114   :  { %v175_v17 = vpop.eup %174 }
 0x115   :  { %v91_v18 = vpack.c.bf16 %v175_v17, %v175_v17 }
 0x117   :  { %161 = vmatmul.msk.bf16.vlgmr.msra.gmra.mxu2 %vm73_vm1, %v91_v18 }
 0x19a   :  { %v121_v20 = vpop.f32.mrf.mxu2 }
 0x19b   :  { %v122_v21 = vadd.f32 %v169_v19, %v121_v20 }
 0x19d   :  { %176 = vtanh.f32 %v122_v21 }
 0x1a2   :  { %v123_v23 = vpop.f32.mrf.mxu2 }
 0x1a3   :  { %v177_v24 = vpop.eup %176 }
 0x1a4   :  { %v127_v25 = vmul.f32 %v177_v24, %v170_v22 }
 0x1a6   :  { %v128_v26 = vsel %vm73_vm1, %v127_v25, 0.0 }
 0x1a7   :  { %129 = vadd.xlane.f32.xlu0 %v128_v26 }
 0x21a   :  { %v130_v28 = vpop.xlane.xlu0 %129 }
 0x21b   :  { %v132_v29 = vadd.f32 %v171_v27, %v130_v28 }
 0x21d   :  { %134 = vst.msk [vmem:[%s252_s5] sm:$0xff] %vm133_vm2, %v132_v29 }

</bundles_post_ra>
